<compile_context>
chip_gen: v7x
topology: tpu7x:2x2x1
jax: 0.10.0
libtpu: 0.0.40
codegen_flags: <defaults>
</compile_context>

<pallas_src>
import functools

import jax
import jax.numpy as jnp
from jax import lax
from jax.experimental import pallas as pl
from jax.experimental.pallas import tpu as pltpu

_LANE = 128      # lane width (last dim)
_SUBLANE = 8     # sublane width (second-to-last dim)


def _round_up(n, m):
    return ((n + m - 1) // m) * m


# ----------------------------- Pallas kernel ------------------------------- #

def _mlp_fused_kernel(*refs, num_layers):
    """Fused MLP: (Linear[+folded BN] -> ReLU) x (L-1) -> Linear.

    refs = (x_ref, w1_ref, ..., wL_ref, bias_ref, o_ref).
    One MXU matmul per layer (bf16 inputs, f32 accumulation); bias/ReLU
    epilogues on the VPU in f32; intermediates never leave the chip.
    """
    x_ref = refs[0]
    w_refs = refs[1:1 + num_layers]
    b_ref = refs[1 + num_layers]          # (num_layers, bias_width) f32, packed
    o_ref = refs[2 + num_layers]

    h = x_ref[...].astype(jnp.bfloat16)   # in-kernel cast: x HBM traffic stays 1x
    for li in range(num_layers):
        w = w_refs[li][...]               # bf16, full (unpadded) weight array
        n = w.shape[1]
        acc = jnp.dot(h, w, preferred_element_type=jnp.float32)
        acc = acc + b_ref[li:li + 1, :n]  # f32 bias row, broadcast over batch tile
        if li < num_layers - 1:           # hidden layers: ReLU (dropout p=0 -> id)
            h = jnp.maximum(acc, 0.0).astype(jnp.bfloat16)
        else:                             # final layer: lane-dense (tb, 128) store
            o_ref[...] = acc.astype(o_ref.dtype)


# --------------------------- parameter handling ----------------------------- #

def init_params(key, input_features, layer_sizes, output_features):
    """Original (unfolded) module parameters, deterministic.

    Linear: W stored transposed as (in, out), U(-1/sqrt(fan_in), 1/sqrt(fan_in))
    (torch.nn.Linear default).  BN running stats are made non-trivial so the
    BN-folding path is actually exercised.
    """
    dims = [int(jnp.prod(jnp.array(input_features)))] + list(layer_sizes)
    params = {"hidden": [], "out": None}
    for i in range(len(layer_sizes)):
        fan_in, fan_out = dims[i], dims[i + 1]
        key, kw, kb, kg, kbt, km, kv = jax.random.split(key, 7)
        bound = 1.0 / jnp.sqrt(fan_in)
        w = jax.random.uniform(kw, (fan_in, fan_out), jnp.float32, -bound, bound)
        b = jax.random.uniform(kb, (fan_out,), jnp.float32, -bound, bound)
        bn = dict(
            gamma=jax.random.uniform(kg, (fan_out,), jnp.float32, 0.5, 1.5),
            beta=0.1 * jax.random.normal(kbt, (fan_out,), jnp.float32),
            mean=0.1 * jax.random.normal(km, (fan_out,), jnp.float32),
            var=jax.random.uniform(kv, (fan_out,), jnp.float32, 0.5, 1.5),
        )
        params["hidden"].append((w, b, bn))
    fan_in = dims[-1]
    key, kw, kb = jax.random.split(key, 3)
    bound = 1.0 / jnp.sqrt(fan_in)
    params["out"] = (
        jax.random.uniform(kw, (fan_in, output_features), jnp.float32, -bound, bound),
        jax.random.uniform(kb, (output_features,), jnp.float32, -bound, bound),
    )
    return params


def prepare_packed_params(params, eps=1e-5, weight_dtype=jnp.bfloat16):
    """One-time prep: fold BN(eval) into each Linear, cast weights to bf16,
    keep hidden weights UNPADDED, pad only the final layer's output dim to 128
    lanes, and pack all biases into a single (num_layers, width) f32 array."""
    hidden = params["hidden"]
    w_out, b_out = params["out"]

    weights, biases = [], []
    for (w, b, bn) in hidden:
        scale = bn["gamma"] * lax.rsqrt(bn["var"] + eps)
        weights.append((w * scale[None, :]).astype(weight_dtype))  # (fan_in, fan_out)
        biases.append((b - bn["mean"]) * scale + bn["beta"])

    n_out = w_out.shape[1]
    out_pad = _round_up(n_out, _LANE)       # final layer only: lane-dense HBM store
    w_last = jnp.zeros((w_out.shape[0], out_pad), jnp.float32).at[:, :n_out].set(w_out)
    weights.append(w_last.astype(weight_dtype))
    biases.append(jnp.zeros((out_pad,), jnp.float32).at[:n_out].set(b_out))

    bias_width = _round_up(max(w.shape[1] for w in weights), _LANE)
    b_all = jnp.zeros((len(weights), bias_width), jnp.float32)
    for i, b in enumerate(biases):
        b_all = b_all.at[i, :b.shape[0]].set(b)

    return dict(weights=tuple(weights), biases=b_all,
                in_features=hidden[0][0].shape[0],
                out_features=n_out, out_pad=out_pad)


# ------------------------------ forward pass -------------------------------- #

def fully_connected_forward(packed, x, *, tb_max=512):
    """Flatten -> fused (Linear+BN+ReLU)*L -> Linear, in one pallas_call."""
    B = x.shape[0]
    x2d = x.reshape(B, -1)                 # Flatten (NCHW row-major); view, no copy
    K = x2d.shape[1]
    assert K == packed["in_features"]

    # Batch tile: multiple of 8 sublanes, big enough to amortize per-step
    # overhead, and (when the batch allows) small enough for >= 2 grid steps so
    # both v7x TensorCores get work via the "parallel" axis.  No padded copy of
    # x: the partial last batch block is handled by Pallas (garbage rows feed
    # rows that are never written back).
    bp8 = _round_up(B, _SUBLANE)
    tb = min(tb_max, bp8)
    half = _round_up(pl.cdiv(bp8, 2), _SUBLANE)
    if half < tb and pl.cdiv(B, half) >= 2:
        tb = half
    grid = (pl.cdiv(B, tb),)

    weights = packed["weights"]
    b_all = packed["biases"]
    num_layers = len(weights)

    in_specs = [pl.BlockSpec((tb, K), lambda i: (i, 0))]
    args = [x2d]
    for w in weights:
        # Full-array blocks (constant index_map): exempt from the (8,128)
        # divisibility rule, so hidden weights stay unpadded -> minimal DMA.
        in_specs.append(pl.BlockSpec(w.shape, lambda i: (0, 0)))
        args.append(w)
    in_specs.append(pl.BlockSpec(b_all.shape, lambda i: (0, 0)))   # packed biases
    args.append(b_all)

    out = pl.pallas_call(
        functools.partial(_mlp_fused_kernel, num_layers=num_layers),
        out_shape=jax.ShapeDtypeStruct((B, packed["out_pad"]), jnp.float32),
        grid_spec=pltpu.PrefetchScalarGridSpec(
            num_scalar_prefetch=0,
            grid=grid,
            in_specs=in_specs,
            out_specs=pl.BlockSpec((tb, packed["out_pad"]), lambda i: (i, 0)),
        ),
        compiler_params=pltpu.CompilerParams(
            dimension_semantics=("parallel",),        # megacore sharding on v7x
            vmem_limit_bytes=32 * 1024 * 1024,        # explicit; usage ~5 MiB
        ),
    )(*args)

    return out[:, :packed["out_features"]]


# ------------------------------- references --------------------------------- #

def reference_forward_original(params, x, eps=1e-5):
    """Original module semantics: Flatten -> (Linear -> BN(eval) -> ReLU)*L -> Linear."""
    B = x.shape[0]
    h = x.reshape(B, -1)
    for (w, b, bn) in params["hidden"]:
        y = h @ w + b
        y = (y - bn["mean"]) * lax.rsqrt(bn["var"] + eps) * bn["gamma"] + bn["beta"]
        h = jnp.maximum(y, 0.0)
    w_out, b_out = params["out"]
    return h @ w_out + b_out


def reference_forward_folded(packed, x):
    """Mirror of the kernel math (BN folded, bf16 matmul inputs, f32 accum)
    in plain JAX, without padding/tiling."""
    h = x.reshape(x.shape[0], -1).astype(jnp.float32)
    weights, b_all = packed["weights"], packed["biases"]
    for li, w in enumerate(weights):
        hq = h.astype(jnp.bfloat16).astype(jnp.float32)
        h = hq @ w.astype(jnp.float32) + b_all[li, :w.shape[1]]
        if li < len(weights) - 1:
            h = jnp.maximum(h, 0.0)
    return h[:, :packed["out_features"]]


# ---------------------------------- main ------------------------------------ #

if __name__ == "__main__":
    key = jax.random.PRNGKey(0)
    kx, kp = jax.random.split(key)

    input_features = (4, 16, 16)                  # (C, H, W)
    layer_sizes = (64, 32)                        # size_layer_1, size_layer_2
    output_features = 16
    batch = 2

    x = jax.random.normal(kx, (batch,) + input_features, jnp.float32)  # NCHW
    params = init_params(kp, input_features, layer_sizes, output_features)
    packed = prepare_packed_params(params)        # one-time: fold BN, bf16, pack biases

    out = fully_connected_forward(packed, x)
    out = jax.block_until_ready(out)
    assert out.shape == (batch, output_features)

    # Tight check: kernel vs identical folded/bf16 math in plain JAX
    # (isolates fusion / tiling / partial-block handling).
    ref_folded = reference_forward_folded(packed, x)
    assert jnp.allclose(out, ref_folded, atol=5e-3, rtol=5e-3), \
        "mismatch vs folded JAX reference"

    # Semantics check: kernel vs original Linear->BN(eval)->ReLU module math in
    # full f32 (looser tolerance covers the bf16 weight/activation quantization).
    ref_orig = reference_forward_original(params, x)
    assert jnp.allclose(out, ref_orig, atol=3e-2, rtol=3e-2), \
        "mismatch vs original-semantics reference"

    print("KERNEL_OK")
</pallas_src>

<mosaic_0001>
module attributes {stable_mosaic.version = 11 : i64} {
  func.func @_mlp_fused_kernel(%arg0: i32, %arg1: memref<8x1024xf32, #tpu.memory_space<vmem>>, %arg2: memref<1024x64xbf16, #tpu.memory_space<vmem>>, %arg3: memref<64x32xbf16, #tpu.memory_space<vmem>>, %arg4: memref<32x128xbf16, #tpu.memory_space<vmem>>, %arg5: memref<3x128xf32, #tpu.memory_space<vmem>>, %arg6: memref<8x128xf32, #tpu.memory_space<vmem>>) attributes {dimension_semantics = [#tpu.dimension_semantics<parallel>], iteration_bounds = array<i64: 1>, scalar_prefetch = 0 : i64, scratch_operands = 0 : i64, tpu.core_type = #tpu.core_type<tc>, window_params = [{transform_indices = @transform_0, window_bounds = array<i64: 8, 1024>}, {pipeline_mode = #tpu.pipeline_mode<synchronous>, transform_indices = @transform_1, window_bounds = array<i64: 1024, 64>}, {pipeline_mode = #tpu.pipeline_mode<synchronous>, transform_indices = @transform_2, window_bounds = array<i64: 64, 32>}, {pipeline_mode = #tpu.pipeline_mode<synchronous>, transform_indices = @transform_3, window_bounds = array<i64: 32, 128>}, {pipeline_mode = #tpu.pipeline_mode<synchronous>, transform_indices = @transform_4, window_bounds = array<i64: 3, 128>}, {transform_indices = @transform_5, window_bounds = array<i64: 8, 128>}]} {
    %c0 = arith.constant 0 : index
    %c0_0 = arith.constant 0 : index
    %0 = vector.load %arg1[%c0, %c0_0] : memref<8x1024xf32, #tpu.memory_space<vmem>>, vector<8x1024xf32>
    %1 = arith.truncf %0 : vector<8x1024xf32> to vector<8x1024xbf16>
    %c0_1 = arith.constant 0 : index
    %c0_2 = arith.constant 0 : index
    %2 = vector.load %arg2[%c0_1, %c0_2] : memref<1024x64xbf16, #tpu.memory_space<vmem>>, vector<1024x64xbf16>
    %cst = arith.constant dense<0.000000e+00> : vector<8x64xf32>
    %3 = tpu.matmul %1, %2, %cst {dimension_numbers = #tpu.dot_dimension_numbers<[1], [0], [0], [1], [0, 0, 1, 1], [], []>} : vector<8x1024xbf16>, vector<1024x64xbf16>, vector<8x64xf32> -> vector<8x64xf32>
    %c0_3 = arith.constant 0 : index
    %c0_4 = arith.constant 0 : index
    %4 = vector.load %arg5[%c0_3, %c0_4] : memref<3x128xf32, #tpu.memory_space<vmem>>, vector<1x64xf32>
    %5 = vector.broadcast %4 : vector<1x64xf32> to vector<8x64xf32>
    %6 = arith.addf %3, %5 : vector<8x64xf32>
    %cst_5 = arith.constant 0.000000e+00 : f32
    %7 = vector.broadcast %cst_5 : f32 to vector<8x64xf32>
    %8 = arith.maximumf %6, %7 : vector<8x64xf32>
    %9 = arith.truncf %8 : vector<8x64xf32> to vector<8x64xbf16>
    %c0_6 = arith.constant 0 : index
    %c0_7 = arith.constant 0 : index
    %10 = vector.load %arg3[%c0_6, %c0_7] : memref<64x32xbf16, #tpu.memory_space<vmem>>, vector<64x32xbf16>
    %cst_8 = arith.constant dense<0.000000e+00> : vector<8x32xf32>
    %11 = tpu.matmul %9, %10, %cst_8 {dimension_numbers = #tpu.dot_dimension_numbers<[1], [0], [0], [1], [0, 0, 1, 1], [], []>} : vector<8x64xbf16>, vector<64x32xbf16>, vector<8x32xf32> -> vector<8x32xf32>
    %c1 = arith.constant 1 : index
    %c0_9 = arith.constant 0 : index
    %12 = vector.load %arg5[%c1, %c0_9] : memref<3x128xf32, #tpu.memory_space<vmem>>, vector<1x32xf32>
    %13 = vector.broadcast %12 : vector<1x32xf32> to vector<8x32xf32>
    %14 = arith.addf %11, %13 : vector<8x32xf32>
    %cst_10 = arith.constant 0.000000e+00 : f32
    %15 = vector.broadcast %cst_10 : f32 to vector<8x32xf32>
    %16 = arith.maximumf %14, %15 : vector<8x32xf32>
    %17 = arith.truncf %16 : vector<8x32xf32> to vector<8x32xbf16>
    %c0_11 = arith.constant 0 : index
    %c0_12 = arith.constant 0 : index
    %18 = vector.load %arg4[%c0_11, %c0_12] : memref<32x128xbf16, #tpu.memory_space<vmem>>, vector<32x128xbf16>
    %cst_13 = arith.constant dense<0.000000e+00> : vector<8x128xf32>
    %19 = tpu.matmul %17, %18, %cst_13 {dimension_numbers = #tpu.dot_dimension_numbers<[1], [0], [0], [1], [0, 0, 1, 1], [], []>} : vector<8x32xbf16>, vector<32x128xbf16>, vector<8x128xf32> -> vector<8x128xf32>
    %c2 = arith.constant 2 : index
    %c0_14 = arith.constant 0 : index
    %20 = vector.load %arg5[%c2, %c0_14] : memref<3x128xf32, #tpu.memory_space<vmem>>, vector<1x128xf32>
    %21 = vector.broadcast %20 : vector<1x128xf32> to vector<8x128xf32>
    %22 = arith.addf %19, %21 : vector<8x128xf32>
    %c0_15 = arith.constant 0 : index
    %c0_16 = arith.constant 0 : index
    %23 = vector.load %arg6[%c0_15, %c0_16] : memref<8x128xf32, #tpu.memory_space<vmem>>, vector<8x128xf32>
    tpu.vector_store %arg6[%c0_15, %c0_16], %22 {strides = array<i32>} : memref<8x128xf32, #tpu.memory_space<vmem>>, vector<8x128xf32>,
    return
  }
  func.func @transform_0(%arg0: i32) -> (i32, i32) {
    %c0_i32 = arith.constant 0 : i32
    %c0_i32_0 = arith.constant 0 : i32
    return %arg0, %c0_i32 : i32, i32
  }
  func.func @transform_1(%arg0: i32) -> (i32, i32) {
    %c0_i32 = arith.constant 0 : i32
    %c0_i32_0 = arith.constant 0 : i32
    %c0_i32_1 = arith.constant 0 : i32
    return %c0_i32, %c0_i32_0 : i32, i32
  }
  func.func @transform_2(%arg0: i32) -> (i32, i32) {
    %c0_i32 = arith.constant 0 : i32
    %c0_i32_0 = arith.constant 0 : i32
    %c0_i32_1 = arith.constant 0 : i32
    return %c0_i32, %c0_i32_0 : i32, i32
  }
  func.func @transform_3(%arg0: i32) -> (i32, i32) {
    %c0_i32 = arith.constant 0 : i32
    %c0_i32_0 = arith.constant 0 : i32
    %c0_i32_1 = arith.constant 0 : i32
    return %c0_i32, %c0_i32_0 : i32, i32
  }
  func.func @transform_4(%arg0: i32) -> (i32, i32) {
    %c0_i32 = arith.constant 0 : i32
    %c0_i32_0 = arith.constant 0 : i32
    %c0_i32_1 = arith.constant 0 : i32
    return %c0_i32, %c0_i32_0 : i32, i32
  }
  func.func @transform_5(%arg0: i32) -> (i32, i32) {
    %c0_i32 = arith.constant 0 : i32
    %c0_i32_0 = arith.constant 0 : i32
    return %arg0, %c0_i32 : i32, i32
  }
}

</mosaic_0001>

<bundles_post_ra>
// kernel: tpu_custom_call.1
= control target key start
LH: loop header
LB: loop body
LE: loop exit
PB: predicated region body
PF: predicated region fallthrough
CT: control target
= control target key end

     0   :  { %10 = vsyncpa [#allocation3], 0  ;;  %v45_v29 = vlaneseq  ;;  %v1273_v34 = vmov 1983009808   ;;  %vm1275_vm0 = vmmov 0   ;;  %vm842_vm1 = vcmask 523264   ;;  %s1574_s0 = inlined_call_operand.vmem [shape: f32[2,1024], index: 0, kind: input, shape index: {}]   ;;  %s1575_s1 = inlined_call_operand.vmem [shape: bf16[1024,64], index: 1, kind: input, shape index: {}]   ;;  %s1576_s2 = inlined_call_operand.vmem [shape: bf16[64,32], index: 2, kind: input, shape index: {}]   ;;  %s1577_s3 = inlined_call_operand.vmem [shape: bf16[32,128], index: 3, kind: input, shape index: {}]   ;;  %s1578_s4 = inlined_call_operand.vmem [shape: f32[3,128], index: 4, kind: input, shape index: {}]   ;;  %s1579_s5 = inlined_call_operand.hbm [shape: f32[2,128], index: 5, kind: output, shape index: {}]  }
   0x1   :  { %v1167_v0 = vld [vmem:[%s1575_s1 + $0x40] sm:$0xff]   ;;  %v1171_v4 = vld [vmem:[%s1575_s1 + $0x48] sm:$0xff]   ;;  %v1175_v8 = vld [vmem:[%s1575_s1 + $0x50] sm:$0xff]   ;;  %v43_v35 = vunpack.c.l.s4 %v1273_v34  ;;  %vm909_vm2 = vcmask 261120  }
   0x2   :  { %v1168_v1 = vld [vmem:[%s1575_s1 + $0xc0] sm:$0xff]   ;;  %1045 = vmatprep.subr.bf16.mxu0 %v1167_v0  ;;  %v1172_v5 = vld [vmem:[%s1575_s1 + $0xc8] sm:$0xff]   ;;  %v1176_v9 = vld [vmem:[%s1575_s1 + $0xd0] sm:$0xff]   ;;  %v46_v36 = vshrl.u32 %v45_v29, 7 }
   0x3   :  { %v1169_v2 = vld [vmem:[%s1575_s1] sm:$0xff]   ;;  %1067 = vmatprep.subr.bf16.mxu1 %v1168_v1  ;;  %v1173_v6 = vld [vmem:[%s1575_s1 + $0x8] sm:$0xff]   ;;  %v1177_v10 = vld [vmem:[%s1575_s1 + $0x10] sm:$0xff]   ;;  %v44_v40 = vunpack.c.0.s8 %v43_v35 }
   0x4   :  { %v1170_v3 = vld [vmem:[%s1575_s1 + $0x80] sm:$0xff]   ;;  %1046 = vmatpush3.bf16.msra.mxu0 %v1169_v2  ;;  %v1174_v7 = vld [vmem:[%s1575_s1 + $0x88] sm:$0xff]   ;;  %v1178_v11 = vld [vmem:[%s1575_s1 + $0x90] sm:$0xff]  }
   0x5   :  { %1068 = vmatpush3.bf16.msra.mxu1 %v1170_v3  ;;  %1047 = vmatprep.subr.bf16.mxu0 %v1171_v4  ;;  %v1179_v12 = vld [vmem:[%s1575_s1 + $0x58] sm:$0xff]   ;;  %v1183_v16 = vld [vmem:[%s1575_s1 + $0x60] sm:$0xff]   ;;  %v1187_v20 = vld [vmem:[%s1575_s1 + $0x68] sm:$0xff]   ;;  %v1423_v43 = vsub.s32 %v44_v40, %v46_v36 }
   0x6   :  { %1069 = vmatprep.subr.bf16.mxu1 %v1172_v5  ;;  %v1180_v13 = vld [vmem:[%s1575_s1 + $0xd8] sm:$0xff]   ;;  %v1184_v17 = vld [vmem:[%s1575_s1 + $0xe0] sm:$0xff]   ;;  %v1188_v21 = vld [vmem:[%s1575_s1 + $0xe8] sm:$0xff]  }
   0x7   :  { %v1181_v14 = vld [vmem:[%s1575_s1 + $0x18] sm:$0xff]   ;;  %v1185_v18 = vld [vmem:[%s1575_s1 + $0x20] sm:$0xff]   ;;  %v1189_v22 = vld [vmem:[%s1575_s1 + $0x28] sm:$0xff]  }
   0x8   :  { %1048 = vmatpush3.bf16.msra.mxu0 %v1173_v6  ;;  %v1182_v15 = vld [vmem:[%s1575_s1 + $0x98] sm:$0xff]   ;;  %v1186_v19 = vld [vmem:[%s1575_s1 + $0xa0] sm:$0xff]   ;;  %v1190_v23 = vld [vmem:[%s1575_s1 + $0xa8] sm:$0xff]  }
   0x9   :  { %1070 = vmatpush3.bf16.msra.mxu1 %v1174_v7  ;;  %1049 = vmatprep.subr.bf16.mxu0 %v1175_v8  ;;  %v1191_v24 = vld [vmem:[%s1575_s1 + $0x70] sm:$0xff]   ;;  %v1195_v28 = vld [vmem:[%s1575_s1 + $0x78] sm:$0xff]   ;;  %v1205_v41 = vld [vmem:[%s1575_s1 + $0x140] sm:$0xff]  }
   0xa   :  { %1071 = vmatprep.subr.bf16.mxu1 %v1176_v9  ;;  %v1192_v25 = vld [vmem:[%s1575_s1 + $0xf0] sm:$0xff]   ;;  %v1196_v30 = vld [vmem:[%s1575_s1 + $0xf8] sm:$0xff]   ;;  %v1206_v42 = vld [vmem:[%s1575_s1 + $0x1c0] sm:$0xff]  }
   0xb   :  { %v1193_v26 = vld [vmem:[%s1575_s1 + $0x30] sm:$0xff]   ;;  %v1197_v31 = vld [vmem:[%s1575_s1 + $0x38] sm:$0xff]   ;;  %v1207_v52 = vld [vmem:[%s1575_s1 + $0x100] sm:$0xff]  }
   0xc   :  { %1050 = vmatpush3.bf16.msra.mxu0 %v1177_v10  ;;  %v1194_v27 = vld [vmem:[%s1575_s1 + $0xb0] sm:$0xff]   ;;  %v1198_v32 = vld [vmem:[%s1575_s1 + $0xb8] sm:$0xff]   ;;  %v1208_v53 = vld [vmem:[%s1575_s1 + $0x180] sm:$0xff]  }
   0xd   :  { %1072 = vmatpush3.bf16.msra.mxu1 %v1178_v11  ;;  %1051 = vmatprep.subr.bf16.mxu0 %v1179_v12  ;;  %v1199_v33 = vld [vmem:[%s1574_s0] ss:$16 sps:$4 sm:$0xff]   ;;  %v1203_v38 = vld [vmem:[%s1574_s0 + $0x4] ss:$16 sps:$4 sm:$0xff]   ;;  %v1209_v58 = vld [vmem:[%s1575_s1 + $0x148] sm:$0xff]  }
   0xe   :  { %1073 = vmatprep.subr.bf16.mxu1 %v1180_v13  ;;  %v1201_v37 = vld [vmem:[%s1574_s0 + $0x20] ss:$16 sps:$4 sm:$0xff]   ;;  %v1204_v39 = vld [vmem:[%s1574_s0 + $0x24] ss:$16 sps:$4 sm:$0xff]   ;;  %v48_v44 = vrot.slane %v1199_v33, %v1423_v43  ;;  %v55_v46 = vrot.slane %v1203_v38, %v1423_v43  ;;  %v1210_v59 = vld [vmem:[%s1575_s1 + $0x1c8] sm:$0xff]  }
   0xf   :  { %v62_v45 = vrot.slane %v1201_v37, %v1423_v43  ;;  %v69_v47 = vrot.slane %v1204_v39, %v1423_v43  ;;  %v1211_v60 = vld [vmem:[%s1575_s1 + $0x108] sm:$0xff]   ;;  %v1213_v62 = vld [vmem:[%s1575_s1 + $0x150] sm:$0xff]   ;;  %v1217_v2 = vld [vmem:[%s1575_s1 + $0x158] sm:$0xff]   ;;  %v1274_v39 = vmov 0.0  }
  0x10   :  { %1052 = vmatpush3.bf16.msra.mxu0 %v1181_v14  ;;  %v1212_v61 = vld [vmem:[%s1575_s1 + $0x188] sm:$0xff]   ;;  %v1214_v63 = vld [vmem:[%s1575_s1 + $0x1d0] sm:$0xff]   ;;  %v1218_v3 = vld [vmem:[%s1575_s1 + $0x1d8] sm:$0xff]  }
  0x11   :  { %1074 = vmatpush3.bf16.msra.mxu1 %v1182_v15  ;;  %1053 = vmatprep.subr.bf16.mxu0 %v1183_v16  ;;  %v71_v48 = vcombine.high %v48_v44, %v62_v45  ;;  %v73_v49 = vcombine.high %v55_v46, %v69_v47  ;;  %v70_v50 = vcombine.low %v48_v44, %v62_v45  ;;  %v1215_v0 = vld [vmem:[%s1575_s1 + $0x110] sm:$0xff]   ;;  %v1219_v4 = vld [vmem:[%s1575_s1 + $0x118] sm:$0xff]   ;;  %v1221_v6 = vld [vmem:[%s1575_s1 + $0x160] sm:$0xff]  }
  0x12   :  { %1075 = vmatprep.subr.bf16.mxu1 %v1184_v17  ;;  %v72_v51 = vcombine.low %v55_v46, %v69_v47  ;;  %v1216_v1 = vld [vmem:[%s1575_s1 + $0x190] sm:$0xff]   ;;  %v1220_v5 = vld [vmem:[%s1575_s1 + $0x198] sm:$0xff]   ;;  %v1222_v7 = vld [vmem:[%s1575_s1 + $0x1e0] sm:$0xff]  }
  0x13   :  { %v119_v54 = vpack.c.bf16 %v71_v48, %v71_v48  ;;  %v121_v55 = vpack.c.bf16 %v73_v49, %v73_v49  ;;  %v118_v56 = vpack.c.bf16 %v70_v50, %v70_v50  ;;  %v1223_v8 = vld [vmem:[%s1575_s1 + $0x120] sm:$0xff]   ;;  %v1225_v10 = vld [vmem:[%s1575_s1 + $0x168] sm:$0xff]   ;;  %v1229_v14 = vld [vmem:[%s1575_s1 + $0x170] sm:$0xff]  }
  0x14   :  { %1054 = vmatpush3.bf16.msra.mxu0 %v1185_v18  ;;  %v120_v57 = vpack.c.bf16 %v72_v51, %v72_v51  ;;  %v1224_v9 = vld [vmem:[%s1575_s1 + $0x1a0] sm:$0xff]   ;;  %v1226_v11 = vld [vmem:[%s1575_s1 + $0x1e8] sm:$0xff]   ;;  %v1230_v15 = vld [vmem:[%s1575_s1 + $0x1f0] sm:$0xff]  }
  0x15   :  { %1076 = vmatpush3.bf16.msra.mxu1 %v1186_v19  ;;  %1055 = vmatprep.subr.bf16.mxu0 %v1187_v20  ;;  %v1227_v12 = vld [vmem:[%s1575_s1 + $0x128] sm:$0xff]   ;;  %v1231_v16 = vld [vmem:[%s1575_s1 + $0x130] sm:$0xff]   ;;  %v1233_v18 = vld [vmem:[%s1575_s1 + $0x178] sm:$0xff]  }
  0x16   :  { %1077 = vmatprep.subr.bf16.mxu1 %v1188_v21  ;;  %675 = vmatprep.mubr.bf16.mxu0 %v119_v54  ;;  %v1228_v13 = vld [vmem:[%s1575_s1 + $0x1a8] sm:$0xff]   ;;  %v1232_v17 = vld [vmem:[%s1575_s1 + $0x1b0] sm:$0xff]   ;;  %v1234_v19 = vld [vmem:[%s1575_s1 + $0x1f8] sm:$0xff]  }
  0x17   :  { %715 = vmatprep.mubr.bf16.mxu1 %v121_v55  ;;  %v1237_v20 = vld [vmem:[%s1574_s0 + $0x8] ss:$16 sps:$4 sm:$0xff]   ;;  %v1243_v38 = vld [vmem:[%s1576_s2] sm:$0xff]  }
  0x18   :  { %1056 = vmatpush3.bf16.msra.mxu0 %v1189_v22  ;;  %v1239_v21 = vld [vmem:[%s1574_s0 + $0x28] ss:$16 sps:$4 sm:$0xff]   ;;  %v970_v46 = vld [vmem:[%s1578_s4] ss:$0 sm:$0xff] }
  0x19   :  { %1078 = vmatpush3.bf16.msra.mxu1 %v1190_v23  ;;  %1057 = vmatprep.subr.bf16.mxu0 %v1191_v24  ;;  %v1235_v22 = vld [vmem:[%s1575_s1 + $0x138] sm:$0xff]   ;;  %v1244_v40 = vld [vmem:[%s1576_s2 + $0x8] sm:$0xff]  }
  0x1a   :  { %1079 = vmatprep.subr.bf16.mxu1 %v1192_v25  ;;  %v1236_v23 = vld [vmem:[%s1575_s1 + $0x1b8] sm:$0xff]  }
  0x1b   :  { %v1241_v24 = vld [vmem:[%s1574_s0 + $0xc] ss:$16 sps:$4 sm:$0xff]  }
  0x1c   :  { %1058 = vmatpush3.bf16.msra.mxu0 %v1193_v26  ;;  %v1242_v25 = vld [vmem:[%s1574_s0 + $0x2c] ss:$16 sps:$4 sm:$0xff]   ;;  %v84_v26 = vrot.slane %v1237_v20, %v1423_v43 }
  0x1d   :  { %1080 = vmatpush3.bf16.msra.mxu1 %v1194_v27  ;;  %1059 = vmatprep.subr.bf16.mxu0 %v1195_v28  ;;  %v98_v27 = vrot.slane %v1239_v21, %v1423_v43  ;;  %v91_v28 = vrot.slane %v1241_v24, %v1423_v43  ;;  %v105_v29 = vrot.slane %v1242_v25, %v1423_v43  ;;  %v1247_v43 = vld [vmem:[%s1577_s3] sm:$0xff]  }
  0x1e   :  { %1081 = vmatprep.subr.bf16.mxu1 %v1196_v30 }
  0x1f   :  { %v107_v30 = vcombine.high %v84_v26, %v98_v27  ;;  %v108_v33 = vcombine.low %v91_v28, %v105_v29 }
  0x20   :  { %1060 = vmatpush3.bf16.msra.mxu0 %v1197_v31  ;;  %v106_v31 = vcombine.low %v84_v26, %v98_v27 }
  0x21   :  { %1082 = vmatpush3.bf16.msra.mxu1 %v1198_v32  ;;  %1089 = vmatprep.subr.bf16.mxu0 %v1205_v41  ;;  %v109_v32 = vcombine.high %v91_v28, %v105_v29  ;;  %v123_v34 = vpack.c.bf16 %v107_v30, %v107_v30  ;;  %v124_v37 = vpack.c.bf16 %v108_v33, %v108_v33  ;;  %v1245_v41 = vld [vmem:[%s1576_s2 + $0x10] sm:$0xff]  }
  0x22   :  { %1111 = vmatprep.subr.bf16.mxu1 %v1206_v42  ;;  %v122_v35 = vpack.c.bf16 %v106_v31, %v106_v31  ;;  %v1246_v42 = vld [vmem:[%s1576_s2 + $0x18] sm:$0xff]  }
  0x23   :  { %676 = vmatmul.mubr.bf16.vlgmr.msra.gmra.mrb[0].mxu0 %v118_v56  ;;  %v125_v36 = vpack.c.bf16 %v109_v32, %v109_v32 }
  0x24   :  { %716 = vmatmul.mubr.bf16.vlgmr.msra.gmra.mrb[0].mxu1 %v120_v57  ;;  %1090 = vmatpush3.bf16.msra.mxu0 %v1207_v52 }
  0x25   :  { %1112 = vmatpush3.bf16.msra.mxu1 %v1208_v53  ;;  %1091 = vmatprep.subr.bf16.mxu0 %v1209_v58 }
  0x26   :  { %1113 = vmatprep.subr.bf16.mxu1 %v1210_v59  ;;  %755 = vmatprep.mubr.bf16.mxu0 %v123_v34 }
  0x27   :  { %795 = vmatprep.mubr.bf16.mxu1 %v125_v36 }
  0x28   :  { %1092 = vmatpush3.bf16.msra.mxu0 %v1211_v60 }
  0x29   :  { %1114 = vmatpush3.bf16.msra.mxu1 %v1212_v61  ;;  %1093 = vmatprep.subr.bf16.mxu0 %v1213_v62 }
  0x2a   :  { %1115 = vmatprep.subr.bf16.mxu1 %v1214_v63 }
  0x2c   :  { %1094 = vmatpush3.bf16.msra.mxu0 %v1215_v0 }
  0x2d   :  { %1116 = vmatpush3.bf16.msra.mxu1 %v1216_v1  ;;  %1095 = vmatprep.subr.bf16.mxu0 %v1217_v2 }
  0x2e   :  { %1117 = vmatprep.subr.bf16.mxu1 %v1218_v3 }
  0x30   :  { %1096 = vmatpush3.bf16.msra.mxu0 %v1219_v4 }
  0x31   :  { %1118 = vmatpush3.bf16.msra.mxu1 %v1220_v5  ;;  %1097 = vmatprep.subr.bf16.mxu0 %v1221_v6 }
  0x32   :  { %1119 = vmatprep.subr.bf16.mxu1 %v1222_v7  ;;  %v1248_v7 = vld [vmem:[%s1577_s3 + $0x8] sm:$0xff]  }
  0x34   :  { %1098 = vmatpush3.bf16.msra.mxu0 %v1223_v8  ;;  %v1035_v8 = vld [vmem:[%s1578_s4 + $0x1] ss:$0 sm:$0xff] }
  0x35   :  { %1120 = vmatpush3.bf16.msra.mxu1 %v1224_v9  ;;  %1099 = vmatprep.subr.bf16.mxu0 %v1225_v10 }
  0x36   :  { %1121 = vmatprep.subr.bf16.mxu1 %v1226_v11 }
  0x38   :  { %1100 = vmatpush3.bf16.msra.mxu0 %v1227_v12 }
  0x39   :  { %1122 = vmatpush3.bf16.msra.mxu1 %v1228_v13  ;;  %1101 = vmatprep.subr.bf16.mxu0 %v1229_v14 }
  0x3a   :  { %1123 = vmatprep.subr.bf16.mxu1 %v1230_v15 }
  0x3c   :  { %1102 = vmatpush3.bf16.msra.mxu0 %v1231_v16  ;;  %v1041_v16 = vld [vmem:[%s1578_s4 + $0x2] ss:$0 sm:$0xff] }
  0x3d   :  { %1124 = vmatpush3.bf16.msra.mxu1 %v1232_v17  ;;  %1103 = vmatprep.subr.bf16.mxu0 %v1233_v18 }
  0x3e   :  { %1125 = vmatprep.subr.bf16.mxu1 %v1234_v19 }
  0x40   :  { %1104 = vmatpush3.bf16.msra.mxu0 %v1235_v22 }
  0x41   :  { %1126 = vmatpush3.bf16.msra.mxu1 %v1236_v23  ;;  %1141 = vmatprep.subr.bf16.mxu0 %v1274_v39 }
  0x42   :  { %1153 = vmatprep.subr.bf16.mxu1 %v1274_v39 }
  0x43   :  { %756 = vmatmul.mubr.bf16.vlgmr.msra.gmra.mrb[4].mxu0 %v122_v35 }
  0x44   :  { %796 = vmatmul.mubr.bf16.vlgmr.msra.gmra.mrb[4].mxu1 %v124_v37  ;;  %1142 = vmatpush3.bf16.msra.mxu0 %v1243_v38 }
  0x45   :  { %1143 = vmatprep.subr.bf16.mxu0 %v1274_v39  ;;  %1149 = vmatprep.mubr.msk.bf16.mxu0 %vm1275_vm0, %v1274_v39 }
  0x46   :  { %1157 = vmatprep.mubr.msk.bf16.mxu1 %vm1275_vm0, %v1274_v39  ;;  %1154 = vmatpush3.bf16.msra.mxu1 %v1247_v43 }
  0x47   :  { %1155 = vmatprep.subr.bf16.mxu1 %v1274_v39 }
  0x48   :  { %1144 = vmatpush3.bf16.msra.mxu0 %v1244_v40 }
  0x49   :  { %1145 = vmatprep.subr.bf16.mxu0 %v1274_v39 }
  0x4a   :  { %1156 = vmatpush3.bf16.msra.mxu1 %v1248_v7 }
  0x4c   :  { %1146 = vmatpush3.bf16.msra.mxu0 %v1245_v41 }
  0x4d   :  { %1147 = vmatprep.subr.bf16.mxu0 %v1274_v39 }
  0x50   :  { %1148 = vmatpush3.bf16.msra.mxu0 %v1246_v42 }
  0xf6   :  { %v1061_v44 = vpop.f32.mrb[0].mxu0 }
  0xf7   :  { %v1083_v45 = vpop.f32.mrb[0].mxu1  ;;  %v1062_v47 = vpop.f32.mrb[1].mxu0 }
  0xf8   :  { %v1084_v48 = vpop.f32.mrb[1].mxu1  ;;  %v1063_v49 = vadd.f32 %v1062_v47, %v1061_v44  ;;  %v1064_v51 = vpop.f32.mrb[2].mxu0 }
  0xf9   :  { %v1085_v50 = vadd.f32 %v1084_v48, %v1083_v45  ;;  %v1086_v52 = vpop.f32.mrb[2].mxu1  ;;  %v1065_v53 = vpop.f32.mrb[3].mxu0 }
  0xfa   :  { %v1087_v54 = vpop.f32.mrb[3].mxu1  ;;  %v678_v55 = vadd.f32 %v1063_v49, %v970_v46 }
  0xfc   :  { %v718_v56 = vadd.f32 %v1085_v50, %v678_v55 }
 0x116   :  { %v1105_v57 = vpop.f32.mrb[4].mxu0 }
 0x117   :  { %v1127_v58 = vpop.f32.mrb[4].mxu1  ;;  %v1106_v59 = vpop.f32.mrb[5].mxu0 }
 0x118   :  { %v1128_v60 = vpop.f32.mrb[5].mxu1  ;;  %v1107_v61 = vadd.f32 %v1106_v59, %v1105_v57  ;;  %v1108_v63 = vpop.f32.mrb[6].mxu0 }
 0x119   :  { %v1129_v62 = vadd.f32 %v1128_v60, %v1127_v58  ;;  %v1130_v0 = vpop.f32.mrb[6].mxu1  ;;  %v1109_v1 = vpop.f32.mrb[7].mxu0 }
 0x11a   :  { %v1131_v2 = vpop.f32.mrb[7].mxu1  ;;  %v758_v3 = vadd.f32 %v1107_v61, %v718_v56 }
 0x11c   :  { %v798_v4 = vadd.f32 %v1129_v62, %v758_v3 }
 0x11e   :  { %v803_v5 = vmax.f32 %v798_v4, 0.0 }
 0x120   :  { %v804_v6 = vpack.c.bf16 %v803_v5, %v803_v5 }
 0x122   :  { %1150 = vmatmul.mubr.msk.bf16.vlgmr.msra.gmra.mrb[8].mxu0 %vm842_vm1, %v804_v6 }
 0x1f5   :  { %v880_v9 = vpop.f32.mrb[8].mxu0 }
 0x1f6   :  { %v881_v10 = vadd.f32 %v1035_v8, %v880_v9  ;;  %v1151_v11 = vpop.f32.mrb[9].mxu0 }
 0x1f7   :  { %v883_v12 = vpop.f32.mrb[10].mxu0 }
 0x1f8   :  { %v886_v13 = vmax.f32 %v881_v10, 0.0  ;;  %v1152_v14 = vpop.f32.mrb[11].mxu0 }
 0x1fa   :  { %v887_v15 = vpack.c.bf16 %v886_v13, %v886_v13 }
 0x1fc   :  { %1158 = vmatmul.mubr.msk.bf16.vlgmr.msra.gmra.mrb[8].mxu1 %vm909_vm2, %v887_v15 }
 0x2cf   :  { %v947_v17 = vpop.f32.mrb[8].mxu1 }
 0x2d0   :  { %v948_v18 = vadd.f32 %v1041_v16, %v947_v17  ;;  %v1159_v19 = vpop.f32.mrb[9].mxu1 }
 0x2d1   :  { %v950_v20 = vpop.f32.mrb[10].mxu1 }
 0x2d2   :  { %953 = vst [vmem:[#allocation2] sm:$0xff] %v948_v18  ;;  %v1160_v21 = vpop.f32.mrb[11].mxu1 }
 0x2d3   :  { %958 = vsyncadd [#allocation3], 96  ;;  %s1276_s3 = smov [#allocation2]  }
 0x2d4   :  { %s959_s27 = sshll.u32 %s1276_s3, 4  ;;  %s960_s27 = int_to_ptr.vmem [resolvable:$true] %s959_s27 }
 0x2d5   :  { %s1249_s28 = scalar_lea.vmem %s960_s27, 32  ;;  %s1253_s29 = scalar_lea.vmem %s960_s27, 128 }
 0x2d6   :  { %p1250_p0 = scmp.ne.s32.totalorder %s960_s27, %s1249_s28  ;;  %p1254_p1 = scmp.lt.s32.totalorder %s960_s27, %s960_s27 }
 0x2d7   :  { %p1255_p2 = scmp.lt.s32.totalorder %s1253_s29, %s1249_s28 }
 0x2d9   :  { %p1256_p3 = por %p1255_p2, %p1254_p1 }
 0x2db   :  { %p1257_p4 = pnand %p1256_p3, %p1250_p0 }
 0x2dd   :  { %1260 = shalt.err (!%p1257_p4)
}
 0x2de   :  { %s1261_s6 = scalar_lea.hbm %s1579_s5, 32 }
 0x2df   :  { %p1262_p5 = scmp.ne.s32.totalorder %s1579_s5, %s1261_s6  ;;  %p1265_p6 = scmp.lt.u32.totalorder %s1261_s6, %s1579_s5 }
 0x2e1   :  { %p1267_p7 = pnand %p1265_p6, %p1262_p5 }
 0x2e3   :  { %1270 = shalt.err (!%p1267_p7)
}
 0x2e4   :  { %s1277_s11 = smov 32   ;;  %s1278_s0 = smov 2  }
 0x2e5   :  { %965 = dma.vmem_to_hbm [thread:$0]  %s960_s27, 32, %s1579_s5, [#allocation3], %s1277_s11, %s1277_s11, %s1278_s0  }
 0x2e6   :  { %1271 = dma.done.wait [#allocation3], 128  }
 0x2e7   :  { %1272 = vsyncadd [#allocation3], 4294967168 }
 0x2e8   :  { %969 = vsyncpa [#allocation3], 1 }

</bundles_post_ra>
